<compile_context>
chip_gen: v7x
topology: tpu7x:2x2x1
jax: 0.10.0
libtpu: 0.0.40
codegen_flags: <defaults>
</compile_context>

<pallas_src>
import functools

import jax
import jax.numpy as jnp
from jax.experimental import pallas as pl
from jax.experimental.pallas import tpu as pltpu


def _mosi_kernel(x_ref, w1t_ref, b1_ref, w2_ref, b2_ref,
                 res_ref, logits_ref, feat_acc, *,
                 inv_s, sub, valid_s, padded, ew_dtype):
    j = pl.program_id(1)

    @pl.when(j == 0)
    def _init():
        feat_acc[...] = jnp.zeros_like(feat_acc)

    tb, _, ts = x_ref.shape
    hid = w1t_ref.shape[0]
    n_sub = ts // sub

    # Hoisted loop invariants (JAX does not CSE broadcast_in_dim in loops).
    w1t = w1t_ref[...]                                            # (HID, C) bf16
    b1b = jnp.broadcast_to(b1_ref[...], (hid, sub)).astype(ew_dtype)
    ones_v = jnp.ones((sub, 1), ew_dtype)                         # MXU pool vector
    col0 = j * ts                                                 # S offset of tile

    # Fused conv -> bias -> ReLU -> pool over lane sub-chunks kept in vregs.
    for b in range(tb):                      # static unroll over clips in block
        acc_b = jnp.zeros((hid, 1), jnp.float32)
        for si in range(n_sub):              # static unroll over lane sub-chunks
            start = si * sub
            xc = x_ref[b, :, pl.ds(start, sub)]                   # (C, sub)
            h = jnp.dot(w1t, xc.astype(w1t.dtype),
                        preferred_element_type=jnp.float32)       # MXU (HID, sub)
            h = jnp.maximum(h.astype(ew_dtype) + b1b, 0.0)        # bias + ReLU
            if padded:                       # mask zero-padded tail columns
                lane = jax.lax.broadcasted_iota(jnp.int32, (1, sub), 1)
                h = jnp.where(col0 + start + lane < valid_s, h, 0.0)
            # Pool on the (otherwise idle) MXU: lane sum, f32 accumulation.
            acc_b = acc_b + jnp.dot(h, ones_v,
                                    preferred_element_type=jnp.float32)
        feat_acc[:, pl.ds(b, 1)] += acc_b                         # (HID, 1) col

    @pl.when(j == pl.num_programs(1) - 1)
    def _finalize():
        featc = feat_acc[...] * inv_s                             # (HID, TB) mean
        # logits = feat @ w2 without an explicit transpose: contract HID axes.
        logits = jax.lax.dot_general(
            featc, w2_ref[...], dimension_numbers=(((0,), (0,)), ((), ())),
            preferred_element_type=jnp.float32) + b2_ref[...]     # (TB, K)
        m = jnp.max(logits, axis=-1, keepdims=True)
        e = jnp.exp(logits - m)
        denom = jnp.sum(e, axis=-1, keepdims=True)
        res = e * pl.reciprocal(denom, approx=True)
        logits_ref[0] = logits
        res_ref[0] = res


def _chip_config():
    """Generation-aware VMEM budget / limit and elementwise dtype."""
    kind = ""
    try:
        kind = jax.devices()[0].device_kind.lower()
    except Exception:
        pass
    vmem_bytes = 0
    try:
        vmem_bytes = int(pltpu.get_tpu_info().vmem_capacity_bytes)
    except Exception:
        vmem_bytes = 0
    if vmem_bytes <= 0:
        is_v7 = ("v7" in kind) or ("7x" in kind)
        vmem_bytes = (64 if is_v7 else 128) * 1024 * 1024
    tile_budget = min(vmem_bytes // 6, 24 * 1024 * 1024)
    vmem_limit = min((vmem_bytes * 3) // 4, 100 * 1024 * 1024)
    # bf16 VPU only on v6e / v7x; keep f32 elementwise on v5e and older.
    if ("v6" in kind) or ("v7" in kind) or ("7x" in kind):
        ew_dtype = jnp.bfloat16
    else:
        ew_dtype = jnp.float32
    return tile_budget, vmem_limit, ew_dtype


def _round_up(v, m):
    return -(-v // m) * m


def _block_cost(tb, ts, c, hid, k, x_itemsize, x_sublane):
    """Approximate VMEM bytes per grid step (padding + double-buffering)."""
    c_pad = _round_up(c, x_sublane)
    k_lanes = _round_up(k, 128)
    hid_sub = _round_up(hid, 8)
    cost = 2 * tb * c_pad * ts * x_itemsize              # x block, double-buffered
    cost += 2 * 2 * _round_up(tb, 8) * k_lanes * 4       # res + logits out blocks
    cost += hid_sub * _round_up(tb, 128) * 4             # feat_acc scratch
    cost += 2 * (hid_sub * _round_up(c, 128) * 2         # w1t (bf16)
                 + hid_sub * 128 * 4                     # b1
                 + hid_sub * k_lanes * 4                 # w2
                 + 8 * k_lanes * 4)                      # b2
    return cost


_TS_CANDIDATES = (4096, 3584, 3072, 2560, 2048, 1536, 1024, 512, 384, 256, 128)


def _choose_tiling(bn, c, s, hid, k, x_itemsize, x_sublane, budget):
    """Pick (clips per step TB, lane tile TS)."""
    # TB capped at 8; prefer G = BN/TB >= 4 (v7x has 2 TCs), then G >= 2.
    tb_candidates = [t for t in range(min(8, bn), 0, -1) if bn % t == 0]

    def g_pref(t):
        g = bn // t
        return 0 if g >= 4 else (1 if g >= 2 else 2)

    tb_candidates.sort(key=lambda t: (g_pref(t), -t))

    ts_cap = min(4096, _round_up(s, 128))
    # Largest lane tile first (lane-dense x DMAs, amortized step overhead);
    # shrink TB before shrinking TS.
    for ts in [t for t in _TS_CANDIDATES if t <= ts_cap]:
        for tb in tb_candidates:
            if _block_cost(tb, ts, c, hid, k, x_itemsize, x_sublane) <= budget:
                # Rebalance TS so the zero-padded tail stays small at the same
                # number of S steps (never increases the VMEM cost).
                sj = -(-s // ts)
                gran = 512 if ts % 512 == 0 else 128
                ts = max(gran, _round_up(-(-s // sj), gran))
                return tb, ts
    return 1, 128


def mosinet_forward(x, w1, b1, w2, b2):
    """MoSINet forward.

    x:  (B, N, C, T, H, W) video clips (native dtype is streamed as-is).
    w1: (C, HID) 1x1x1-conv weight, b1: (HID,) bias.
    w2: (HID, K) head weight, b2: (K,) bias.
    Returns ({'move_joint': softmax(logits)}, logits), each (B*N, K).
    """
    B, N, C, T, H, W = x.shape
    BN = B * N
    S = T * H * W
    HID = w1.shape[1]
    K = w2.shape[1]

    # MoSINet glue: (b, n, c, t, h, w) -> (b*n, c, t*h*w). A *free* reshape of
    # the native NCTHW layout: the big video tensor is streamed from HBM once,
    # lane-dense along S, in its native dtype (no host-side bf16 copy pass —
    # the bf16 cast for the MXU happens per-chunk inside the kernel).
    xk = x.reshape(BN, C, S)

    tile_budget, vmem_limit, ew_dtype = _chip_config()
    x_itemsize = xk.dtype.itemsize
    x_sublane = {4: 8, 2: 16, 1: 32}.get(x_itemsize, 8)

    TB, TS = _choose_tiling(BN, C, S, HID, K, x_itemsize, x_sublane, tile_budget)
    SJ = -(-S // TS)                  # S-reduction steps ("arbitrary" grid axis)
    S_pad = SJ * TS
    if S_pad != S:
        # Zero-pad S to the lane tile; padded columns are masked in-kernel.
        xk = jnp.pad(xk, ((0, 0), (0, 0), (0, S_pad - S)))
    G = BN // TB                      # clip-block steps ("parallel" grid axis)

    # Sub-chunk width for the fused conv->ReLU->pool loop (kept in vregs).
    if TS % 512 == 0:
        sub = 512
    elif TS % 256 == 0:
        sub = 256
    else:
        sub = 128
    if HID > 128 and sub > 128:
        sub //= 2                     # keep the (HID, sub) chunk within vregs

    w1t = jnp.asarray(w1, jnp.float32).T.astype(jnp.bfloat16)     # (HID, C)
    b1k = jnp.asarray(b1, jnp.float32).reshape(HID, 1)            # (HID, 1)
    w2k = jnp.asarray(w2, jnp.float32)                            # (HID, K)
    b2k = jnp.asarray(b2, jnp.float32).reshape(1, K)              # (1, K)

    grid_spec = pltpu.PrefetchScalarGridSpec(
        num_scalar_prefetch=0,
        grid=(G, SJ),
        in_specs=[
            pl.BlockSpec((TB, C, TS), lambda i, j: (i, 0, j)),
            pl.BlockSpec((HID, C), lambda i, j: (0, 0)),
            pl.BlockSpec((HID, 1), lambda i, j: (0, 0)),
            pl.BlockSpec((HID, K), lambda i, j: (0, 0)),
            pl.BlockSpec((1, K), lambda i, j: (0, 0)),
        ],
        out_specs=[
            pl.BlockSpec((1, TB, K), lambda i, j: (i, 0, 0)),
            pl.BlockSpec((1, TB, K), lambda i, j: (i, 0, 0)),
        ],
        scratch_shapes=[pltpu.VMEM((HID, TB), jnp.float32)],
    )

    kernel = functools.partial(
        _mosi_kernel, inv_s=1.0 / S, sub=sub, valid_s=S,
        padded=(S_pad != S), ew_dtype=ew_dtype)

    res3, logits3 = pl.pallas_call(
        kernel,
        out_shape=(
            jax.ShapeDtypeStruct((G, TB, K), jnp.float32),
            jax.ShapeDtypeStruct((G, TB, K), jnp.float32),
        ),
        grid_spec=grid_spec,
        compiler_params=pltpu.CompilerParams(
            dimension_semantics=("parallel", "arbitrary"),
            vmem_limit_bytes=vmem_limit,
        ),
    )(xk, w1t, b1k, w2k, b2k)

    res = res3.reshape(BN, K)
    logits = logits3.reshape(BN, K)
    return {"move_joint": res}, logits


def _reference(x, w1, b1, w2, b2):
    B, N, C, T, H, W = x.shape
    xk = x.reshape(B * N, C, T * H * W)
    # Match the kernel's bf16 MXU inputs; elementwise / pooling stay f32.
    xf = xk.astype(jnp.bfloat16).astype(jnp.float32)
    w1f = jnp.asarray(w1, jnp.float32).astype(jnp.bfloat16).astype(jnp.float32)
    h = jnp.maximum(jnp.einsum("bcs,ch->bhs", xf, w1f)
                    + b1.reshape(1, -1, 1), 0.0)
    feat = jnp.mean(h, axis=-1)
    logits = feat @ w2 + b2.reshape(1, -1)
    res = jax.nn.softmax(logits, axis=-1)
    return {"move_joint": res}, logits


if __name__ == "__main__":
    key = jax.random.PRNGKey(0)
    kx, k1, k2, k3, k4 = jax.random.split(key, 5)

    # small shapes consistent with MoSINet's (b, n, c, t, h, w) input
    B, N, C, T, H, W = 2, 2, 4, 4, 8, 8
    HID, K = 32, 8

    x = jax.random.normal(kx, (B, N, C, T, H, W), dtype=jnp.float32)
    w1 = jax.random.normal(k1, (C, HID), dtype=jnp.float32) * 0.1
    b1 = jax.random.normal(k2, (HID,), dtype=jnp.float32) * 0.1
    w2 = jax.random.normal(k3, (HID, K), dtype=jnp.float32) * 0.1
    b2 = jax.random.normal(k4, (K,), dtype=jnp.float32) * 0.1

    pred, logits = mosinet_forward(x, w1, b1, w2, b2)
    jax.block_until_ready((pred, logits))

    ref_pred, ref_logits = _reference(x, w1, b1, w2, b2)
    # bf16 MXU inputs, bf16 elementwise on v6e/v7x, approx-reciprocal softmax
    # -> slightly looser tolerances (softmax rows may not sum to exactly 1).
    assert jnp.allclose(logits, ref_logits, atol=5e-3, rtol=5e-3)
    assert jnp.allclose(pred["move_joint"], ref_pred["move_joint"],
                        atol=5e-3, rtol=5e-3)

    print("KERNEL_OK")
</pallas_src>

<mosaic_0001>
module attributes {stable_mosaic.version = 11 : i64} {
  func.func @_mosi_kernel(%arg0: i32, %arg1: i32, %arg2: memref<1x4x256xf32, #tpu.memory_space<vmem>>, %arg3: memref<32x4xbf16, #tpu.memory_space<vmem>>, %arg4: memref<32x1xf32, #tpu.memory_space<vmem>>, %arg5: memref<32x8xf32, #tpu.memory_space<vmem>>, %arg6: memref<1x8xf32, #tpu.memory_space<vmem>>, %arg7: memref<1x1x8xf32, #tpu.memory_space<vmem>>, %arg8: memref<1x1x8xf32, #tpu.memory_space<vmem>>, %arg9: memref<32x1xf32, #tpu.memory_space<vmem>>) attributes {dimension_semantics = [#tpu.dimension_semantics<parallel>, #tpu.dimension_semantics<arbitrary>], iteration_bounds = array<i64: 4, 1>, scalar_prefetch = 0 : i64, scratch_operands = 1 : i64, tpu.core_type = #tpu.core_type<tc>, window_params = [{transform_indices = @transform_0, window_bounds = array<i64: 1, 4, 256>}, {pipeline_mode = #tpu.pipeline_mode<synchronous>, transform_indices = @transform_1, window_bounds = array<i64: 32, 4>}, {pipeline_mode = #tpu.pipeline_mode<synchronous>, transform_indices = @transform_2, window_bounds = array<i64: 32, 1>}, {pipeline_mode = #tpu.pipeline_mode<synchronous>, transform_indices = @transform_3, window_bounds = array<i64: 32, 8>}, {pipeline_mode = #tpu.pipeline_mode<synchronous>, transform_indices = @transform_4, window_bounds = array<i64: 1, 8>}, {transform_indices = @transform_5, window_bounds = array<i64: 1, 1, 8>}, {transform_indices = @transform_6, window_bounds = array<i64: 1, 1, 8>}]} {
    %c0_i32 = arith.constant 0 : i32
    %0 = arith.cmpi eq, %arg1, %c0_i32 : i32
    %1 = arith.extui %0 : i1 to i32
    %c0_i32_0 = arith.constant 0 : i32
    %2 = arith.cmpi ne, %1, %c0_i32_0 : i32
    scf.if %2 {
      %cst_17 = arith.constant 0.000000e+00 : f32
      %24 = vector.broadcast %cst_17 : f32 to vector<32x1xf32>
      %c0_18 = arith.constant 0 : index
      %c0_19 = arith.constant 0 : index
      %25 = vector.load %arg9[%c0_18, %c0_19] : memref<32x1xf32, #tpu.memory_space<vmem>>, vector<32x1xf32>
      tpu.vector_store %arg9[%c0_18, %c0_19], %24 {strides = array<i32>} : memref<32x1xf32, #tpu.memory_space<vmem>>, vector<32x1xf32>,
    } else {
    }
    %c0 = arith.constant 0 : index
    %c0_1 = arith.constant 0 : index
    %3 = vector.load %arg3[%c0, %c0_1] : memref<32x4xbf16, #tpu.memory_space<vmem>>, vector<32x4xbf16>
    %c0_2 = arith.constant 0 : index
    %c0_3 = arith.constant 0 : index
    %4 = vector.load %arg4[%c0_2, %c0_3] : memref<32x1xf32, #tpu.memory_space<vmem>>, vector<32x1xf32>
    %5 = vector.shape_cast %4 : vector<32x1xf32> to vector<32x1xf32>
    %6 = vector.broadcast %5 : vector<32x1xf32> to vector<32x256xf32>
    %cst = arith.constant 1.000000e+00 : f32
    %7 = vector.broadcast %cst : f32 to vector<256x1xf32>
    %cst_4 = arith.constant 0.000000e+00 : f32
    %8 = vector.broadcast %cst_4 : f32 to vector<32x1xf32>
    %c0_5 = arith.constant 0 : index
    %c0_6 = arith.constant 0 : index
    %c0_7 = arith.constant 0 : index
    %9 = vector.load %arg2[%c0_5, %c0_6, %c0_7] : memref<1x4x256xf32, #tpu.memory_space<vmem>>, vector<1x4x256xf32>
    %10 = vector.shape_cast %9 : vector<1x4x256xf32> to vector<4x256xf32>
    %11 = arith.truncf %10 : vector<4x256xf32> to vector<4x256xbf16>
    %cst_8 = arith.constant dense<0.000000e+00> : vector<32x256xf32>
    %12 = tpu.matmul %3, %11, %cst_8 {dimension_numbers = #tpu.dot_dimension_numbers<[1], [0], [0], [1], [0, 0, 1, 1], [], []>} : vector<32x4xbf16>, vector<4x256xbf16>, vector<32x256xf32> -> vector<32x256xf32>
    %13 = arith.addf %12, %6 : vector<32x256xf32>
    %cst_9 = arith.constant 0.000000e+00 : f32
    %14 = vector.broadcast %cst_9 : f32 to vector<32x256xf32>
    %15 = arith.maximumf %13, %14 : vector<32x256xf32>
    %cst_10 = arith.constant dense<0.000000e+00> : vector<32x1xf32>
    %16 = tpu.matmul %15, %7, %cst_10 {dimension_numbers = #tpu.dot_dimension_numbers<[1], [0], [0], [1], [0, 0, 1, 1], [], []>} : vector<32x256xf32>, vector<256x1xf32>, vector<32x1xf32> -> vector<32x1xf32>
    %17 = arith.addf %8, %16 : vector<32x1xf32>
    %c0_11 = arith.constant 0 : index
    %c0_12 = arith.constant 0 : index
    %18 = vector.load %arg9[%c0_11, %c0_12] : memref<32x1xf32, #tpu.memory_space<vmem>>, vector<32x1xf32>
    %19 = arith.addf %18, %17 : vector<32x1xf32>
    %c0_13 = arith.constant 0 : index
    %c0_14 = arith.constant 0 : index
    %20 = vector.load %arg9[%c0_13, %c0_14] : memref<32x1xf32, #tpu.memory_space<vmem>>, vector<32x1xf32>
    tpu.vector_store %arg9[%c0_13, %c0_14], %19 {strides = array<i32>} : memref<32x1xf32, #tpu.memory_space<vmem>>, vector<32x1xf32>,
    %c0_i32_15 = arith.constant 0 : i32
    %21 = arith.cmpi eq, %arg1, %c0_i32_15 : i32
    %22 = arith.extui %21 : i1 to i32
    %c0_i32_16 = arith.constant 0 : i32
    %23 = arith.cmpi ne, %22, %c0_i32_16 : i32
    scf.if %23 {
      %c0_17 = arith.constant 0 : index
      %c0_18 = arith.constant 0 : index
      %24 = vector.load %arg9[%c0_17, %c0_18] : memref<32x1xf32, #tpu.memory_space<vmem>>, vector<32x1xf32>
      %cst_19 = arith.constant 3.906250e-03 : f32
      %25 = vector.broadcast %cst_19 : f32 to vector<32x1xf32>
      %26 = arith.mulf %24, %25 : vector<32x1xf32>
      %c0_20 = arith.constant 0 : index
      %c0_21 = arith.constant 0 : index
      %27 = vector.load %arg5[%c0_20, %c0_21] : memref<32x8xf32, #tpu.memory_space<vmem>>, vector<32x8xf32>
      %cst_22 = arith.constant dense<0.000000e+00> : vector<1x8xf32>
      %28 = tpu.matmul %26, %27, %cst_22 {dimension_numbers = #tpu.dot_dimension_numbers<[0], [0], [1], [1], [0, 1, 1, 1], [], []>} : vector<32x1xf32>, vector<32x8xf32>, vector<1x8xf32> -> vector<1x8xf32>
      %c0_23 = arith.constant 0 : index
      %c0_24 = arith.constant 0 : index
      %29 = vector.load %arg6[%c0_23, %c0_24] : memref<1x8xf32, #tpu.memory_space<vmem>>, vector<1x8xf32>
      %30 = arith.addf %28, %29 : vector<1x8xf32>
      %cst_25 = arith.constant dense<0xFF800000> : vector<1xf32>
      %31 = vector.multi_reduction <maximumf>, %30, %cst_25 [1] : vector<1x8xf32> to vector<1xf32>
      %32 = vector.shape_cast %31 : vector<1xf32> to vector<1x1xf32>
      %33 = vector.broadcast %32 : vector<1x1xf32> to vector<1x8xf32>
      %34 = arith.subf %30, %33 : vector<1x8xf32>
      %35 = math.exp %34 : vector<1x8xf32>
      %cst_26 = arith.constant dense<0.000000e+00> : vector<1xf32>
      %36 = vector.multi_reduction <add>, %35, %cst_26 [1] : vector<1x8xf32> to vector<1xf32>
      %37 = vector.shape_cast %36 : vector<1xf32> to vector<1x1xf32>
      %38 = tpu.reciprocal %37 {approx = true} : vector<1x1xf32> -> vector<1x1xf32>
      %39 = vector.broadcast %38 : vector<1x1xf32> to vector<1x8xf32>
      %40 = arith.mulf %35, %39 : vector<1x8xf32>
      %c0_27 = arith.constant 0 : index
      %c0_28 = arith.constant 0 : index
      %c0_29 = arith.constant 0 : index
      %41 = vector.load %arg8[%c0_27, %c0_28, %c0_29] : memref<1x1x8xf32, #tpu.memory_space<vmem>>, vector<1x1x8xf32>
      %42 = vector.shape_cast %41 : vector<1x1x8xf32> to vector<1x8xf32>
      %43 = vector.shape_cast %30 : vector<1x8xf32> to vector<1x1x8xf32>
      tpu.vector_store %arg8[%c0_27, %c0_28, %c0_29], %43 {strides = array<i32>} : memref<1x1x8xf32, #tpu.memory_space<vmem>>, vector<1x1x8xf32>,
      %c0_30 = arith.constant 0 : index
      %c0_31 = arith.constant 0 : index
      %c0_32 = arith.constant 0 : index
      %44 = vector.load %arg7[%c0_30, %c0_31, %c0_32] : memref<1x1x8xf32, #tpu.memory_space<vmem>>, vector<1x1x8xf32>
      %45 = vector.shape_cast %44 : vector<1x1x8xf32> to vector<1x8xf32>
      %46 = vector.shape_cast %40 : vector<1x8xf32> to vector<1x1x8xf32>
      tpu.vector_store %arg7[%c0_30, %c0_31, %c0_32], %46 {strides = array<i32>} : memref<1x1x8xf32, #tpu.memory_space<vmem>>, vector<1x1x8xf32>,
    } else {
    }
    return
  }
  func.func @transform_0(%arg0: i32, %arg1: i32) -> (i32, i32, i32) {
    %c0_i32 = arith.constant 0 : i32
    %c0_i32_0 = arith.constant 0 : i32
    return %arg0, %c0_i32, %arg1 : i32, i32, i32
  }
  func.func @transform_1(%arg0: i32, %arg1: i32) -> (i32, i32) {
    %c0_i32 = arith.constant 0 : i32
    %c0_i32_0 = arith.constant 0 : i32
    %c0_i32_1 = arith.constant 0 : i32
    return %c0_i32, %c0_i32_0 : i32, i32
  }
  func.func @transform_2(%arg0: i32, %arg1: i32) -> (i32, i32) {
    %c0_i32 = arith.constant 0 : i32
    %c0_i32_0 = arith.constant 0 : i32
    %c0_i32_1 = arith.constant 0 : i32
    return %c0_i32, %c0_i32_0 : i32, i32
  }
  func.func @transform_3(%arg0: i32, %arg1: i32) -> (i32, i32) {
    %c0_i32 = arith.constant 0 : i32
    %c0_i32_0 = arith.constant 0 : i32
    %c0_i32_1 = arith.constant 0 : i32
    return %c0_i32, %c0_i32_0 : i32, i32
  }
  func.func @transform_4(%arg0: i32, %arg1: i32) -> (i32, i32) {
    %c0_i32 = arith.constant 0 : i32
    %c0_i32_0 = arith.constant 0 : i32
    %c0_i32_1 = arith.constant 0 : i32
    return %c0_i32, %c0_i32_0 : i32, i32
  }
  func.func @transform_5(%arg0: i32, %arg1: i32) -> (i32, i32, i32) {
    %c0_i32 = arith.constant 0 : i32
    %c0_i32_0 = arith.constant 0 : i32
    %c0_i32_1 = arith.constant 0 : i32
    return %arg0, %c0_i32, %c0_i32_0 : i32, i32, i32
  }
  func.func @transform_6(%arg0: i32, %arg1: i32) -> (i32, i32, i32) {
    %c0_i32 = arith.constant 0 : i32
    %c0_i32_0 = arith.constant 0 : i32
    %c0_i32_1 = arith.constant 0 : i32
    return %arg0, %c0_i32, %c0_i32_0 : i32, i32, i32
  }
}

</mosaic_0001>

<bundles_post_ra>
// kernel: tpu_custom_call.1
= control target key start
LH: loop header
LB: loop body
LE: loop exit
PB: predicated region body
PF: predicated region fallthrough
CT: control target
= control target key end

     0   :  { %s1756_s0 = inlined_call_operand.hbm [shape: f32[4,4,256], index: 0, kind: input, shape index: {}]   ;;  %s1757_s1 = inlined_call_operand.hbm [shape: bf16[32,4], index: 1, kind: input, shape index: {}]   ;;  %s1758_s2 = inlined_call_operand.hbm [shape: f32[32,1], index: 2, kind: input, shape index: {}]   ;;  %s1759_s3 = inlined_call_operand.hbm [shape: f32[32,8], index: 3, kind: input, shape index: {}]   ;;  %s1760_s4 = inlined_call_operand.hbm [shape: f32[1,8], index: 4, kind: input, shape index: {}]   ;;  %s1761_s5 = inlined_call_operand.hbm [shape: f32[4,1,8], index: 5, kind: output, shape index: {0}]   ;;  %s1762_s6 = inlined_call_operand.hbm [shape: f32[4,1,8], index: 6, kind: output, shape index: {1}]  }
   0x1   :  { %1769 = sst [smem:[#allocation20_spill]] %s1761_s5 }
   0x2   :  { %12 = vsyncpa [#allocation4], 0 }
   0x3   :  { %14 = vsyncpa [#allocation4 + $0x1], 0 }
   0x4   :  { %15 = vsyncpa [#allocation7], 0 }
   0x5   :  { %16 = vsyncpa [#allocation10], 0 }
   0x6   :  { %17 = vsyncpa [#allocation5], 0 }
   0x7   :  { %19 = vsyncpa [#allocation5 + $0x1], 0 }
   0x8   :  { %20 = vsyncpa [#allocation14], 0 }
   0x9   :  { %22 = vsyncpa [#allocation14 + $0x1], 0  ;;  %s1439_s21 = smov 0   ;;  %s1441_s22 = smov 0  }
   0xa   :  { %s1443_s23 = smov 0   ;;  %s1445_s24 = smov 0  }
   0xb   :  { %s1447_s25 = smov 0   ;;  %s1449_s26 = smov 0  }
   0xc LB: > { %s1766_s27 = sadd.s32 4294967295, %s1386_s26   ;;  %p888_p0 = scmp.ge.s32.totalorder %s1386_s26, 1  ;;  %s1386_s26 = sphi %s1449_s26, %s28_s26   ;;  %s1382_s25 = sphi %s1447_s25, %s1790_s25   ;;  %s1378_s24 = sphi %s1445_s24, %s1789_s24   ;;  %s1374_s23 = sphi %s1443_s23, %s1788_s23   ;;  %s1370_s22 = sphi %s1441_s22, %s1787_s22   ;;  %s1366_s21 = sphi %s1439_s21, %s1786_s21  }
   0xd   : > { %p1473_p1 = scmp.eq.s32.totalorder %s1766_s27, 0  ;;  %p209_p2 = scmp.lt.s32.totalorder %s1386_s26, 5 }
   0xe   : > { %s1388_s30 = smov [#allocation6]   ;;  %s1389_s9 = smov [#allocation9]  }
   0xf   : > { %s1770_s28 = scalar_select %p1473_p1, 1, 0 }
  0x10   : > { %p1478_p3 = pnand %p888_p0, %p209_p2  ;;  %s221_s7 = sshll.u32 %s1388_s30, 4  ;;  %s222_s7 = int_to_ptr.vmem [resolvable:$true] %s221_s7 }
  0x11   : > { %s247_s10 = sshll.u32 %s1389_s9, 4  ;;  %s1122_s13 = scalar_lea.hbm %s1757_s1, 256  ;;  %s248_s10 = int_to_ptr.vmem [resolvable:$true] %s247_s10 }
  0x12   : > { %s1771_s29 = scalar_select %p1478_p3, 1, 0 }
  0x13   : > { %p1018_p4 = pneg %p1478_p3  ;;  %p1123_p6 = scmp.ne.s32.totalorder %s1757_s1, %s1122_s13 }
  0x14   : > { %p1129_p10 = scmp.lt.u32.totalorder %s1122_s13, %s1757_s1 }
  0x15   : > { %p1486_p5 = pnand %p1018_p4, %p1473_p1 }
  0x17   : > { %p1498_p7 = pneg %p1486_p5 }
  0x19   : > { %p1125_p8 = pnand %p1498_p7, %p1123_p6 }
  0x1b   : > { %p1126_p9 = pneg %p1125_p8 }
  0x1d   : > { %p1131_p11 = pnand %p1129_p10, %p1126_p9 }
  0x1f   : > { %1134 = shalt.err (!%p1131_p11)
}
  0x20   : > { %s1135_s19 = scalar_lea.vmem %s222_s7, 256  ;;  %p1143_p2 = scmp.lt.s32.totalorder %s222_s7, %s222_s7 }
  0x21   : > { %p1136_p12 = scmp.ne.s32.totalorder %s222_s7, %s1135_s19  ;;  %p1144_p4 = scmp.lt.s32.totalorder %s1135_s19, %s1135_s19 }
  0x23   : > { %p1138_p13 = pnand %p1136_p12, %p1498_p7  ;;  %p1145_p3 = por %p1144_p4, %p1143_p2 }
  0x25   : > { %p1139_p0 = pneg %p1138_p13 }
  0x27   : > { %p1146_p1 = pnand %p1145_p3, %p1139_p0 }
  0x29   : > { %1149 = shalt.err (!%p1146_p1)
}
  0x2a   : > { %s1390_s20 = smov 64   ;;  %s1391_s30 = smov 4  }
  0x2b   : > { %1021 = dma.hbm_to_vmem [thread:$0]  (!%p1486_p5), %s1757_s1, 256, %s222_s7, [#allocation7], %s1390_s20, %s1390_s20, %s1391_s30  }
  0x2c   : > { %s1392_s12 = smov [#allocation8]   ;;  %s1150_s17 = scalar_lea.hbm %s1759_s3, 512 }
  0x2d   : > { %s234_s13 = sshll.u32 %s1392_s12, 4  ;;  %p1151_p1 = scmp.ne.s32.totalorder %s1759_s3, %s1150_s17  ;;  %s235_s13 = int_to_ptr.vmem [resolvable:$true] %s234_s13 }
  0x2e   : > { %p1157_p8 = scmp.lt.u32.totalorder %s1150_s17, %s1759_s3 }
  0x2f   : > { %p1153_p3 = pnand %p1151_p1, %p1498_p7 }
  0x31   : > { %p1154_p6 = pneg %p1153_p3 }
  0x33   : > { %p1159_p9 = pnand %p1157_p8, %p1154_p6 }
  0x35   : > { %1162 = shalt.err (!%p1159_p9)
}
  0x36   : > { %s1163_s7 = scalar_lea.vmem %s248_s10, 512  ;;  %p1171_p13 = scmp.lt.s32.totalorder %s248_s10, %s248_s10 }
  0x37   : > { %p1164_p10 = scmp.ne.s32.totalorder %s248_s10, %s1163_s7  ;;  %p1172_p0 = scmp.lt.s32.totalorder %s1163_s7, %s1163_s7 }
  0x39   : > { %p1166_p11 = pnand %p1164_p10, %p1498_p7  ;;  %p1173_p2 = por %p1172_p0, %p1171_p13 }
  0x3b   : > { %p1167_p12 = pneg %p1166_p11 }
  0x3d   : > { %p1174_p4 = pnand %p1173_p2, %p1167_p12 }
  0x3f   : > { %1177 = shalt.err (!%p1174_p4)
}
  0x40   : > { %s1393_s20 = smov 128   ;;  %s1394_s30 = smov 8  }
  0x41   : > { %1027 = dma.hbm_to_vmem [thread:$0]  (!%p1486_p5), %s1759_s3, 512, %s248_s10, [#allocation10], %s1393_s20, %s1393_s20, %s1394_s30  }
  0x42   : > { %s1178_s12 = scalar_lea.hbm %s1758_s2, 512 }
  0x43   : > { %p1179_p1 = scmp.ne.s32.totalorder %s1758_s2, %s1178_s12  ;;  %p1185_p8 = scmp.lt.u32.totalorder %s1178_s12, %s1758_s2 }
  0x45   : > { %p1181_p3 = pnand %p1179_p1, %p1498_p7 }
  0x47   : > { %p1182_p6 = pneg %p1181_p3 }
  0x49   : > { %p1187_p9 = pnand %p1185_p8, %p1182_p6 }
  0x4b   : > { %1190 = shalt.err (!%p1187_p9)
}
  0x4c   : > { %s1191_s19 = scalar_lea.vmem %s235_s13, 512  ;;  %p1199_p13 = scmp.lt.s32.totalorder %s235_s13, %s235_s13 }
  0x4d   : > { %p1192_p10 = scmp.ne.s32.totalorder %s235_s13, %s1191_s19  ;;  %p1200_p0 = scmp.lt.s32.totalorder %s1191_s19, %s1191_s19 }
  0x4f   : > { %p1194_p11 = pnand %p1192_p10, %p1498_p7  ;;  %p1201_p2 = por %p1200_p0, %p1199_p13 }
  0x51   : > { %p1195_p12 = pneg %p1194_p11 }
  0x53   : > { %p1202_p4 = pnand %p1201_p2, %p1195_p12 }
  0x55   : > { %1205 = shalt.err (!%p1202_p4)
}
  0x56   : > { %1024 = dma.hbm_to_vmem [thread:$0]  (!%p1486_p5), %s1758_s2, 512, %s235_s13, [#allocation7], %s1393_s20, %s1393_s20, %s1394_s30  }
  0x57   : > { %s1395_s5 = smov [#allocation11]   ;;  %s1206_s12 = scalar_lea.hbm %s1760_s4, 16 }
  0x58   : > { %s261_s27 = sshll.u32 %s1395_s5, 4  ;;  %p1207_p1 = scmp.ne.s32.totalorder %s1760_s4, %s1206_s12  ;;  %s262_s27 = int_to_ptr.vmem [resolvable:$true] %s261_s27 }
  0x59   : > { %p1213_p8 = scmp.lt.u32.totalorder %s1206_s12, %s1760_s4 }
  0x5a   : > { %p1209_p3 = pnand %p1207_p1, %p1498_p7 }
  0x5c   : > { %p1210_p6 = pneg %p1209_p3 }
  0x5e   : > { %p1215_p9 = pnand %p1213_p8, %p1210_p6 }
  0x60   : > { %1218 = shalt.err (!%p1215_p9)
}
  0x61   : > { %s1219_s13 = scalar_lea.vmem %s262_s27, 16  ;;  %s1226_s20 = scalar_lea.vmem %s262_s27, 32 }
  0x62   : > { %p1220_p10 = scmp.ne.s32.totalorder %s262_s27, %s1219_s13  ;;  %p1227_p13 = scmp.lt.s32.totalorder %s262_s27, %s262_s27 }
  0x63   : > { %p1228_p0 = scmp.lt.s32.totalorder %s1226_s20, %s1219_s13 }
  0x64   : > { %p1222_p11 = pnand %p1220_p10, %p1498_p7 }
  0x65   : > { %p1229_p2 = por %p1228_p0, %p1227_p13 }
  0x66   : > { %p1223_p12 = pneg %p1222_p11 }
  0x68   : > { %p1230_p4 = pnand %p1229_p2, %p1223_p12 }
  0x6a   : > { %1233 = shalt.err (!%p1230_p4)
}
  0x6b   : > { %1030 = dma.hbm_to_vmem [thread:$0]  (!%p1486_p5), %s1760_s4, 16, %s262_s27, [#allocation10]  }
  0x6c   : > { %s887_s16 = sadd.s32 4294967294, %s1386_s26   ;;  %s40_s10 = sadd.s32 1, %s1382_s25 }
  0x6d   : > { %p42_p7 = scmp.ge.s32.totalorder %s40_s10, 4  ;;  %s49_s8 = sadd.s32 1, %s1374_s23 }
  0x6e   : > { %p56_p1 = scmp.ne.s32.totalorder %s1374_s23, %s1370_s22  ;;  %p57_p3 = scmp.eq.s32.totalorder %s1386_s26, 0 }
  0x6f   : > { %s1792_s10 = smov (%p42_p7, %s40_s10), 0  ;;  %p62_p8 = scmp.ne.s32.totalorder %s1370_s22, %s1366_s21 }
  0x70   : > { %p1576_p6 = por %p57_p3, %p56_p1  ;;  %s44_s5 = ssub.s32 %s1382_s25, %s1792_s10 }
  0x71   : > { %s1775_s27 = sadd.s32 4294967295, %s1386_s26   ;;  %p47_p9 = scmp.eq.s32.totalorder %s44_s5, 0 }
  0x72   : > { %p170_p5 = scmp.eq.s32.totalorder %s1775_s27, 3  ;;  %p1776_p10 = scmp.ne.s32.totalorder %s1770_s28, 0 }
  0x73   : > { %p176_p13 = scmp.eq.s32.totalorder %s887_s16, 3  ;;  %p1046_p2 = scmp.lt.s32.totalorder %s1386_s26, 4 }
  0x74   : > { %p1588_p11 = por %p1776_p10, %p62_p8  ;;  %p1592_p12 = por %p170_p5, %p56_p1 }
  0x75   : > { %s1597_s12 = scalar_select %p47_p9, %s1374_s23, %s49_s8  }
  0x76   : > { %s1778_s11 = scalar_select %p1592_p12, 1, 0 }
  0x77   : > { %p1599_p0 = por %p176_p13, %p62_p8  ;;  %s272_s15 = sand.u32 1, %s1374_s23  }
  0x78   : > { %s913_s17 = sshll.u32 %s1382_s25, 7  ;;  %s894_s18 = sshll.u32 %s272_s15, 3 }
  0x79   : > { %s1779_s14 = scalar_select %p1599_p0, 1, 0 }
  0x7a   : > { %s1609_s30 = scalar_lea.hbm %s1756_s0, %s913_s17  ;;  %s276_s19 = scalar_lea.vmem [#allocation3], %s894_s18 }
  0x7b   : > { %s286_s16 = sshll.u32 %s276_s19, 4  ;;  %p1613_p4 = pnand %p1046_p2, %p1576_p6  ;;  %s1617_s16 = int_to_ptr.vmem [resolvable:$true] %s286_s16 }
  0x7c   : > { %s273_s5 = scalar_lea.sflag [#allocation4], %s272_s15  ;;  %s1234_s27 = scalar_lea.hbm %s1609_s30, 128 }
  0x7d   : > { %p1235_p7 = scmp.ne.s32.totalorder %s1609_s30, %s1234_s27  ;;  %p1236_p1 = pneg %p1613_p4 }
  0x7e   : > { %s1239_s7 = scalar_lea.hbm %s1756_s0, 512  ;;  %p1240_p6 = scmp.lt.u32.totalorder %s1609_s30, %s1756_s0 }
  0x7f   : > { %p1237_p3 = pnand %p1236_p1, %p1235_p7  ;;  %p1241_p5 = scmp.lt.u32.totalorder %s1239_s7, %s1234_s27 }
  0x80   : > { %p1243_p10 = scmp.lt.u32.totalorder %s1234_s27, %s1609_s30 }
  0x81   : > { %p1238_p8 = pneg %p1237_p3  ;;  %p1242_p9 = por %p1241_p5, %p1240_p6 }
  0x83   : > { %p1244_p13 = por %p1243_p10, %p1242_p9 }
  0x85   : > { %p1245_p2 = pnand %p1244_p13, %p1238_p8 }
  0x87   : > { %1248 = shalt.err (!%p1245_p2)
}
  0x88   : > { %s1249_s15 = scalar_lea.vmem %s1617_s16, 128  ;;  %s1396_s19 = smov [#allocation3]  }
  0x89   : > { %p1250_p7 = scmp.ne.s32.totalorder %s1617_s16, %s1249_s15  ;;  %s1254_s17 = sshll.u32 %s1396_s19, 4  ;;  %s1255_s17 = int_to_ptr.vmem [resolvable:$false] %s1254_s17 }
  0x8a   : > { %s1256_s18 = scalar_lea.vmem %s1255_s17, 256  ;;  %p1257_p12 = scmp.lt.s32.totalorder %s1617_s16, %s1255_s17 }
  0x8b   : > { %p1252_p3 = pnand %p1250_p7, %p1236_p1  ;;  %p1258_p6 = scmp.lt.s32.totalorder %s1256_s18, %s1249_s15 }
  0x8d   : > { %p1253_p0 = pneg %p1252_p3  ;;  %p1259_p5 = por %p1258_p6, %p1257_p12 }
  0x8f   : > { %p1260_p9 = pnand %p1259_p5, %p1253_p0 }
  0x91   : > { %1263 = shalt.err (!%p1260_p9)
}
  0x92   : > { %1034 = dma.hbm_to_vmem [thread:$0]  (!%p1613_p4), %s1609_s30, 128, %s1617_s16, %s273_s5  }
  0x93   : > { %p1781_p8 = scmp.ne.s32.totalorder %s1771_s29, 0 }
  0x94   : > { %s1647_s27 = sand.u32 (!%p1781_p8), 1, %s1370_s22  }
  0x95   : > { %295 = sbr.rel (%p1781_p8) target bundleno = 1287 (0x507), region = 40  ;;  %s898_s7 = sshll.u32 (!%p1781_p8), %s1647_s27, 3 }
  0x96   : > { %s298_s13 = scalar_lea.sflag (!%p1781_p8), [#allocation4], %s1647_s27  ;;  %s301_s20 = scalar_lea.vmem (!%p1781_p8), [#allocation3], %s898_s7 }
  0x9c   : > { %1345 = dma.done.wait (%p1588_p11), %s298_s13, 128  }
  0x9d   : > { %1347 = vsyncadd (%p1588_p11), %s298_s13, 4294967168  ;;  %p1782_p12 = scmp.ne.s32.totalorder %s1770_s28, 0 }
  0x9f   : > { %1349 = dma.done.wait (%p1782_p12), [#allocation7], 768  }
  0xa0   : > { %1351 = vsyncadd (%p1782_p12), [#allocation7], 4294966528 }
  0xa1   : > { %1353 = dma.done.wait (%p1782_p12), [#allocation10], 528  }
  0xa2   : > { %1355 = vsyncadd (%p1782_p12), [#allocation10], 4294966768  ;;  %v1397_v0 = vmov 0   ;;  %v1398_v1 = vmov 1.0|1.0   ;;  %v388_v2 = vld [vmem:[%s301_s20] sm:$0xff] }
  0xa3   : > { %450 = vmatprep.mubr.bf16.mxu0 %v1397_v0  ;;  %1113 = vset.pattern.permute.xlu0 %v1397_v0  ;;  %vm411_vm0 = vcmask 1041408   ;;  %v390_v3 = vcombine.high %v388_v2, %v388_v2  ;;  %v392_v4 = vpack.c.bf16 %v388_v2, %v388_v2  ;;  %v364_v5 = vld [vmem:[#allocation8] sm:$0xff]  ;;  %v366_v8 = vld [vmem:[#allocation8 + $0x10] sm:$0xff]  ;;  %v365_v9 = vld [vmem:[#allocation8 + $0x8] sm:$0xff]  ;;  %vm404_vm1 = vcmask 31744   ;;  %s348_s28 = scalar_lea.vmem [#allocation13], %s1647_s27 }
  0xa4   : > { %1114 = vset.pattern.permute.xlu1 %v1397_v0  ;;  %974 = vmatprep.subr.bf16.mxu1 %v1398_v1  ;;  %v1116_v10 = vld [vmem:[#allocation6] sm:$0xff]   ;;  %v367_v11 = vld [vmem:[#allocation8 + $0x18] sm:$0xff]  ;;  %vm355_vm2 = vcmask 7168   ;;  %v1399_v41 = vmov 0.0   ;;  %v588_v42 = vld [vmem:[#allocation9] sm:$0xff]  ;;  %v1400_v45 = vmov 0.0|0.0  }
  0xa5   : > { %975 = vmatpush3.bf16.msra.mxu1 %v1398_v1  ;;  %v393_v6 = vpack.c.bf16 %v390_v3, %v390_v3  ;;  %v413_v7 = vsel %vm411_vm0, %v392_v4, 0  ;;  %370 = vperm.xlu0 %1113, %v364_v5   ;;  %v1117_v12 = vld [vmem:[#allocation6 + $0x8] sm:$0xff]   ;;  %356 = vst.msk [vmem:[#allocation2] sm:$0xff] %vm355_vm2, %v1399_v41  ;;  %357 = vst.msk [vmem:[#allocation2 + $0x8] sm:$0xff] %vm355_vm2, %v1399_v41  ;;  %v589_v43 = vld [vmem:[#allocation9 + $0x8] sm:$0xff]  ;;  %vm1401_vm3 = vmmov 0  }
  0xa6   : > { %976 = vmatprep.subr.bf16.mxu1 %v1398_v1  ;;  %380 = vperm.xlu1 %1114, %v366_v8   ;;  %358 = vst.msk [vmem:[#allocation2 + $0x10] sm:$0xff] %vm355_vm2, %v1399_v41  ;;  %359 = vst.msk [vmem:[#allocation2 + $0x18] sm:$0xff] %vm355_vm2, %v1399_v41  ;;  %v590_v44 = vld [vmem:[#allocation9 + $0x10] sm:$0xff]  ;;  %v991_v46 = vpack.c.bf16 %v589_v43, %v588_v42  ;;  %v591_v47 = vld [vmem:[#allocation9 + $0x18] sm:$0xff]  ;;  %vm625_vm4 = vcmask 261120   ;;  %vm699_vm5 = vcmask 57344  }
  0xa7   : > { %905 = vmatprep.subr.msk.bf16.mxu0 %vm411_vm0, %v393_v6  ;;  %v994_v48 = vpack.c.bf16 %v591_v47, %v590_v44  ;;  %s909_s29 = sshll.u32 %s1378_s24, 4  ;;  %s743_s8 = sshll.u32 %s348_s28, 4  ;;  %s744_s8 = int_to_ptr.vmem [resolvable:$true] %s743_s8 }
  0xa8   : > { %419 = vmatpush1.bf16.msra.mxu0 %v413_v7  ;;  %s1681_s16 = scalar_lea.hbm %s1762_s6, %s909_s29  ;;  %s718_s5 = scalar_lea.sflag [#allocation14], %s1647_s27 }
  0xa9   : > { %977 = vmatpush3.bf16.msra.mxu1 %v1398_v1  ;;  %375 = vperm.xlu0 %1113, %v365_v9   ;;  %s1264_s15 = scalar_lea.vmem %s744_s8, 16  ;;  %p1783_p0 = scmp.ne.s32.totalorder %s1778_s11, 0 }
  0xaa   : > { %978 = vmatprep.subr.bf16.mxu1 %v1398_v1  ;;  %385 = vperm.xlu1 %1114, %v367_v11   ;;  %p1265_p11 = scmp.ne.s32.totalorder %s744_s8, %s1264_s15  ;;  %s1402_s19 = smov [#allocation13]  }
  0xab   : > { %906 = vmatmul.mubr.msk.bf16.vlgmr.msra.gmra.mrb[0].mxu0 %vm404_vm1, %v1116_v10  ;;  %990 = vmatprep.subr.bf16.mxu0 %v1400_v45  ;;  %s1268_s17 = sshll.u32 %s1402_s19, 4  ;;  %s1269_s17 = int_to_ptr.vmem [resolvable:$false] %s1268_s17 }
  0xac   : > { %460 = vmatprep.mubr.bf16.mxu0 %v1397_v0  ;;  %992 = vmatpush3.bf16.msra.mxu0 %v991_v46  ;;  %v564_v51 = vld [vmem:[#allocation2] sm:$0xff]  ;;  %v565_v56 = vld [vmem:[#allocation2 + $0x8] sm:$0xff]  ;;  %p1266_p4 = pnand %p1265_p11, %p1783_p0  ;;  %s1270_s18 = scalar_lea.vmem %s1269_s17, 32 }
  0xad   : > { %979 = vmatpush3.bf16.msra.mxu1 %v1398_v1  ;;  %993 = vmatprep.subr.bf16.mxu0 %v1400_v45  ;;  %v566_v61 = vld [vmem:[#allocation2 + $0x10] sm:$0xff]  ;;  %v567_v2 = vld [vmem:[#allocation2 + $0x18] sm:$0xff]  ;;  %p1271_p10 = scmp.lt.s32.totalorder %s744_s8, %s1269_s17  ;;  %p1272_p13 = scmp.lt.s32.totalorder %s1270_s18, %s1264_s15 }
  0xae   : > { %980 = vmatprep.subr.bf16.mxu1 %v1398_v1  ;;  %p1267_p1 = pneg %p1266_p4 }
  0xaf   : > { %p1273_p2 = por %p1272_p13, %p1271_p10 }
  0xb0   : > { %995 = vmatpush3.bf16.msra.mxu0 %v994_v48 }
  0xb1   : > { %981 = vmatpush3.bf16.msra.mxu1 %v1398_v1  ;;  %p1274_p7 = pnand %p1273_p2, %p1267_p1 }
  0xb2   : > { %982 = vmatprep.subr.bf16.mxu1 %v1398_v1 }
  0xb3   : > { %907 = vmatmul.mubr.msk.bf16.gmra.mrb[4].mxu0 %vm404_vm1, %v1117_v12 }
  0xb4   : > { %971 = vmatprep.mubr.msk.f32.mxu0 %vm1401_vm3, %v1399_v41 }
  0xb5   : > { %983 = vmatpush3.bf16.msra.mxu1 %v1398_v1 }
  0xb6   : > { %984 = vmatprep.subr.bf16.mxu1 %v1398_v1 }
  0xb9   : > { %985 = vmatpush3.bf16.msra.mxu1 %v1398_v1 }
  0xba   : > { %986 = vmatprep.subr.bf16.mxu1 %v1398_v1 }
  0xbd   : > { %987 = vmatpush3.bf16.msra.mxu1 %v1398_v1 }
  0xbe   : > { %988 = vmatprep.subr.bf16.mxu1 %v1398_v1 }
  0xc1   : > { %989 = vmatpush3.bf16.msra.mxu1 %v1398_v1 }
 0x124   : > { %v371_v13 = vpop.permute.xlu0 %370 }
 0x125   : > { %v381_v22 = vpop.permute.xlu1 %380 }
 0x128   : > { %v376_v17 = vpop.permute.xlu0 %375 }
 0x129   : > { %v386_v31 = vpop.permute.xlu1 %385 }
 0x17e   : > { %v452_v14 = vpop.f32.mrb[0].mxu0 }
 0x17f   : > { %v453_v15 = vadd.f32 %v452_v14, %v371_v13  ;;  %v454_v16 = vpop.f32.mrb[1].mxu0  ;;  %v592_v14 = vld [vmem:[#allocation11] sm:$0x1] }
 0x180   : > { %v456_v18 = vpop.f32.mrb[2].mxu0  ;;  %v455_v19 = vadd.f32 %v454_v16, %v371_v13 }
 0x181   : > { %v458_v20 = vpop.f32.mrb[3].mxu0  ;;  %v471_v24 = vmax.f32 %v453_v15, 0.0  ;;  %v457_v25 = vadd.f32 %v456_v18, %v376_v17 }
 0x182   : > { %v459_v21 = vadd.f32 %v458_v20, %v376_v17  ;;  %v472_v23 = vmax.f32 %v455_v19, 0.0 }
 0x183   : > { %v473_v28 = vmax.f32 %v457_v25, 0.0 }
 0x184   : > { %v474_v26 = vmax.f32 %v459_v21, 0.0  ;;  %543 = vmatprep.mubr.f32.mxu1 %v472_v23 }
 0x185   : > { %544 = vmatmul.mubr.f32.vlgmr.msra.gmra.mrb[0].mxu1 %v471_v24 }
 0x186   : > { %v462_v27 = vpop.f32.mrb[4].mxu0  ;;  %548 = vmatprep.mubr.f32.mxu1 %v474_v26 }
 0x187   : > { %v463_v29 = vadd.f32 %v462_v27, %v381_v22  ;;  %v464_v30 = vpop.f32.mrb[5].mxu0 }
 0x188   : > { %v465_v32 = vadd.f32 %v464_v30, %v381_v22  ;;  %v466_v33 = vpop.f32.mrb[6].mxu0 }
 0x189   : > { %v468_v34 = vpop.f32.mrb[7].mxu0  ;;  %549 = vmatmul.mubr.f32.gmra.mrb[2].mxu1 %v473_v28  ;;  %v475_v37 = vmax.f32 %v463_v29, 0.0  ;;  %v467_v38 = vadd.f32 %v466_v33, %v386_v31 }
 0x18a   : > { %v476_v35 = vmax.f32 %v465_v32, 0.0  ;;  %v469_v36 = vadd.f32 %v468_v34, %v386_v31 }
 0x18b   : > { %v477_v40 = vmax.f32 %v467_v38, 0.0 }
 0x18c   : > { %v478_v39 = vmax.f32 %v469_v36, 0.0  ;;  %553 = vmatprep.mubr.f32.mxu1 %v476_v35 }
 0x18d   : > { %554 = vmatmul.mubr.f32.gmra.mrb[4].mxu1 %v475_v37 }
 0x18e   : > { %558 = vmatprep.mubr.f32.mxu1 %v478_v39 }
 0x191   : > { %559 = vmatmul.mubr.f32.gmra.mrb[6].mxu1 %v477_v40 }
 0x258   : > { %v946_v49 = vpop.f32.mrb[0].mxu1 }
 0x259   : > { %v947_v50 = vpop.f32.mrb[1].mxu1 }
 0x25a   : > { %v948_v52 = vadd.f32 %v947_v50, %v946_v49 }
 0x25c   : > { %v568_v53 = vadd.f32 %v948_v52, %v564_v51  ;;  %v949_v54 = vpop.f32.mrb[2].mxu1 }
 0x25d   : > { %v950_v55 = vpop.f32.mrb[3].mxu1 }
 0x25e   : > { %573 = vst.msk [vmem:[#allocation2] sm:$0xff] %vm355_vm2, %v568_v53  ;;  %v951_v57 = vadd.f32 %v950_v55, %v949_v54 }
 0x260   : > { %v569_v58 = vadd.f32 %v951_v57, %v565_v56  ;;  %v952_v59 = vpop.f32.mrb[4].mxu1 }
 0x261   : > { %v953_v60 = vpop.f32.mrb[5].mxu1 }
 0x262   : > { %574 = vst.msk [vmem:[#allocation2 + $0x8] sm:$0xff] %vm355_vm2, %v569_v58  ;;  %v954_v62 = vadd.f32 %v953_v60, %v952_v59 }
 0x264   : > { %v570_v63 = vadd.f32 %v954_v62, %v566_v61  ;;  %v955_v0 = vpop.f32.mrb[6].mxu1 }
 0x265   : > { %v956_v1 = vpop.f32.mrb[7].mxu1  ;;  %v580_v3 = vld [vmem:[#allocation2] sm:$0xff] }
 0x266   : > { %575 = vst.msk [vmem:[#allocation2 + $0x10] sm:$0xff] %vm355_vm2, %v570_v63  ;;  %v957_v4 = vadd.f32 %v956_v1, %v955_v0  ;;  %v584_v5 = vmul.f32 0.00390625, %v580_v3 }
 0x268   : > { %v571_v6 = vadd.f32 %v957_v4, %v567_v2  ;;  %593 = vxpose.xlu0.b32.start [1/4] (short) (narrow) %v584_v5, 8 }
 0x269   : > { %v581_v7 = vld [vmem:[#allocation2 + $0x8] sm:$0xff] }
 0x26a   : > { %576 = vst.msk [vmem:[#allocation2 + $0x18] sm:$0xff] %vm355_vm2, %v571_v6  ;;  %v585_v8 = vmul.f32 0.00390625, %v581_v7 }
 0x26c   : > { %594 = vxpose.xlu0.b32.cont [2/4] (short) (narrow) %v585_v8, 8 }
 0x26d   : > { %v582_v9 = vld [vmem:[#allocation2 + $0x10] sm:$0xff] }
 0x26e   : > { %v586_v10 = vmul.f32 0.00390625, %v582_v9 }
 0x270   : > { %595 = vxpose.xlu0.b32.cont [3/4] (short) (narrow) %v586_v10, 8 }
 0x271   : > { %v583_v11 = vld [vmem:[#allocation2 + $0x18] sm:$0xff] }
 0x272   : > { %v587_v12 = vmul.f32 0.00390625, %v583_v11 }
 0x274   : > { %596 = vxpose.xlu0.b32.end [4/4] (short) (narrow) %v587_v12, 8 }
 0x2e8   : > { %v609_v13 = vpop.trf.xlu0 }
 0x2e9   : > { %972 = vmatmul.mubr.msk.f32.vlgmr.msra.gmra.mrb[8].mxu0 %vm625_vm4, %v609_v13 }
 0x3bc   : > { %v695_v15 = vpop.f32.mrb[8].mxu0 }
 0x3bd   : > { %v696_v16 = vadd.f32 %v695_v15, %v592_v14  ;;  %v973_v17 = vpop.f32.mrb[9].mxu0 }
 0x3bf   : > { %v700_v18 = vsel %vm699_vm5, %v696_v16, -inf  ;;  %711 = vst.msk [vmem:[%s348_s28] sm:$0x1] %vm699_vm5, %v696_v16 }
 0x3c0   : > { %701 = vmax.xlane.f32.xlu1 %v700_v18 }
 0x44d   : > { %v702_v19 = vpop.xlane.xlu1 %701 }
 0x44e   : > { %v703_v20 = vsub.f32 %v696_v16, %v702_v19 }
 0x450   : > { %v704_v21 = vmul.f32 1.442695, %v703_v20 }
 0x452   : > { %1118 = vpow2.f32 %v704_v21 }
 0x45c   : > { %v1119_v22 = vpop.eup %1118 }
 0x45d   : > { %v706_v23 = vsel %vm699_vm5, %v1119_v22, 0.0 }
 0x45e   : > { %707 = vadd.xlane.f32.xlu1 %v706_v23 }
 0x45f   : > { %1277 = shalt.err (!%p1274_p7)
}
 0x460   : > { %s1278_s7 = scalar_lea.hbm %s1681_s16, 16  ;;  %s1282_s28 = scalar_lea.hbm %s1762_s6, 64 }
 0x461   : > { %p1279_p3 = scmp.ne.s32.totalorder %s1681_s16, %s1278_s7  ;;  %p1283_p9 = scmp.lt.u32.totalorder %s1681_s16, %s1762_s6 }
 0x462   : > { %p1284_p8 = scmp.lt.u32.totalorder %s1282_s28, %s1278_s7  ;;  %p1286_p11 = scmp.lt.u32.totalorder %s1278_s7, %s1681_s16 }
 0x463   : > { %p1280_p6 = pnand %p1279_p3, %p1783_p0 }
 0x464   : > { %p1285_p12 = por %p1284_p8, %p1283_p9 }
 0x465   : > { %p1281_p5 = pneg %p1280_p6 }
 0x466   : > { %p1287_p4 = por %p1286_p11, %p1285_p12 }
 0x468   : > { %p1288_p1 = pnand %p1287_p4, %p1281_p5 }
 0x46a   : > { %1291 = shalt.err (!%p1288_p1)
}
 0x46b   : > { %1015 = dma.vmem_to_hbm [thread:$0]  (%p1783_p0), %s744_s8, 16, %s1681_s16, %s718_s5  }
 0x46c   : > { %s342_s15 = scalar_lea.vmem [#allocation12], %s1647_s27  ;;  %s1784_s7 = sld [smem:[#allocation20_spill]] }
 0x46d   : > { %s730_s19 = sshll.u32 %s342_s15, 4  ;;  %s714_s16 = scalar_lea.sflag [#allocation5], %s1647_s27  ;;  %s1709_s19 = int_to_ptr.vmem [resolvable:$true] %s730_s19 }
 0x46e   : > { %s1292_s8 = scalar_lea.vmem %s1709_s19, 16  ;;  %s1403_s5 = smov [#allocation12]  }
 0x46f   : > { %p1293_p10 = scmp.ne.s32.totalorder %s1709_s19, %s1292_s8  ;;  %s1296_s24 = sshll.u32 %s1403_s5, 4  ;;  %s1297_s24 = int_to_ptr.vmem [resolvable:$false] %s1296_s24 }
 0x470   : > { %s1298_s20 = scalar_lea.vmem %s1297_s24, 32  ;;  %p1299_p7 = scmp.lt.s32.totalorder %s1709_s19, %s1297_s24 }
 0x471   : > { %p1294_p13 = pnand %p1293_p10, %p1783_p0  ;;  %p1300_p3 = scmp.lt.s32.totalorder %s1298_s20, %s1292_s8 }
 0x472   : > { %s1707_s13 = scalar_lea.hbm %s1784_s7, %s909_s29 }
 0x473   : > { %p1295_p2 = pneg %p1294_p13  ;;  %p1301_p6 = por %p1300_p3, %p1299_p7 }
 0x475   : > { %p1302_p5 = pnand %p1301_p6, %p1295_p2 }
 0x4eb   : > { %v708_v24 = vpop.xlane.xlu1 %707 }
 0x4ec   : > { %1120 = vrcp.f32 %v708_v24 }
 0x4f6   : > { %v1121_v25 = vpop.eup %1120 }
 0x4f7   : > { %v710_v26 = vmul.f32 %v1121_v25, %v1119_v22 }
 0x4f9   : > { %712 = vst.msk [vmem:[%s342_s15] sm:$0x1] %vm699_vm5, %v710_v26 }
 0x4fa   : > { %1305 = shalt.err (!%p1302_p5)
}
 0x4fb   : > { %s1306_s27 = scalar_lea.hbm %s1707_s13, 16  ;;  %s1310_s9 = scalar_lea.hbm %s1784_s7, 64 }
 0x4fc   : > { %p1307_p9 = scmp.ne.s32.totalorder %s1707_s13, %s1306_s27  ;;  %p1311_p11 = scmp.lt.u32.totalorder %s1707_s13, %s1784_s7 }
 0x4fd   : > { %p1312_p4 = scmp.lt.u32.totalorder %s1310_s9, %s1306_s27  ;;  %p1314_p10 = scmp.lt.u32.totalorder %s1306_s27, %s1707_s13 }
 0x4fe   : > { %p1308_p8 = pnand %p1307_p9, %p1783_p0 }
 0x4ff   : > { %p1313_p1 = por %p1312_p4, %p1311_p11 }
 0x500   : > { %p1309_p12 = pneg %p1308_p8 }
 0x501   : > { %p1315_p13 = por %p1314_p10, %p1313_p1 }
 0x503   : > { %p1316_p2 = pnand %p1315_p13, %p1309_p12 }
 0x505   : > { %1319 = shalt.err (!%p1316_p2)
}
 0x506   : > { %1014 = dma.vmem_to_hbm [thread:$0]  (%p1783_p0), %s1709_s19, 16, %s1707_s13, %s714_s16  }
 0x507 PF: > { %p1051_p7 = scmp.ge.s32.totalorder %s1386_s26, 2  ;;  %s755_s17 = sand.u32 1, %s1366_s21  }
 0x508   : > { %p1785_p3 = scmp.ne.s32.totalorder %s1779_s14, 0  ;;  %s756_s18 = scalar_lea.sflag [#allocation5], %s755_s17 }
 0x50a   : > { %p1036_p6 = pnand %p1051_p7, %p1785_p3 }
 0x50c   : > { %1357 = dma.done.wait (!%p1036_p6), %s756_s18, 16  }
 0x50d   : > { %1359 = vsyncadd (!%p1036_p6), %s756_s18, 4294967280  ;;  %s764_s8 = scalar_lea.sflag [#allocation14], %s755_s17 }
 0x50e   : > { %1361 = dma.done.wait (!%p1036_p6), %s764_s8, 16  }
 0x50f   : > { %1363 = vsyncadd (!%p1036_p6), %s764_s8, 4294967280  ;;  %s28_s26 = sadd.s32 1, %s1386_s26   ;;  %s1786_s21 = smov %s1370_s22 }
 0x510   : > { %p25_p5 = scmp.ge.s32.totalorder %s28_s26, 6   ;;  %s1787_s22 = smov %s1374_s23 }
 0x511   : > { %s1788_s23 = smov %s1597_s12  ;;  %s1789_s24 = smov %s1382_s25 }
 0x512   : > { %s1790_s25 = smov %s1792_s10  ;;  %27 = sbr.rel (!%p25_p5) target bundleno = 12 (0xc), region = 126 }
 0x519   :  { %768 = vsyncpa [#allocation4], 1 }
 0x51a   :  { %770 = vsyncpa [#allocation4 + $0x1], 1 }
 0x51b   :  { %771 = vsyncpa [#allocation7], 1 }
 0x51c   :  { %772 = vsyncpa [#allocation10], 1 }
 0x51d   :  { %773 = vsyncpa [#allocation5], 1 }
 0x51e   :  { %775 = vsyncpa [#allocation5 + $0x1], 1 }
 0x51f   :  { %776 = vsyncpa [#allocation14], 1 }
 0x520   :  { %778 = vsyncpa [#allocation14 + $0x1], 1 }

</bundles_post_ra>
